<compile_context>
chip_gen: v7x
topology: tpu7x:2x2x1
jax: 0.10.0
libtpu: 0.0.40
codegen_flags: <defaults>
</compile_context>

<pallas_src>
import functools

import numpy as np
import jax
import jax.numpy as jnp
from jax.experimental import pallas as pl
from jax.experimental.pallas import tpu as pltpu

EMB = 16                          # emb_size
HEADS = 4                         # n_heads
HEAD_DIM = EMB // HEADS
SCALING = float(HEAD_DIM ** 0.5)  # (emb_size // n_heads) ** 0.5
LN_EPS = 1e-5
INV_SQRT2 = 0.7071067811865476
NEG_INF = -1e9                    # additive mask value (exp underflows to 0)


# --------------------------------------------------------------------------
# Layout of the single packed parameter array (shared by wrapper & kernel).
# --------------------------------------------------------------------------
def _param_layout(bn, e):
    def up8(r):
        return ((r + 7) // 8) * 8
    off = {}
    r = 0
    off['wqkv'] = r; r = up8(r + e)        # (E, 3E)  packed [Q|K|V]
    off['wfc1'] = r; r = up8(r + e)        # (E, 2E)
    off['wfc2'] = r; r = up8(r + 2 * e)    # (2E, E)
    off['wpro'] = r; r = up8(r + e)        # (E, E)
    off['mask'] = r; r = up8(r + bn)       # (BN, BN) additive cross-batch mask
    off['gamma'] = r; r += 1
    off['beta'] = r; r += 1
    off['bqkv'] = r; r += 1                # (3E,)
    off['bpro'] = r; r += 1
    off['bfc1'] = r; r += 1                # (2E,)
    off['bfc2'] = r; r += 1
    off['rows'] = up8(r)
    off['cols'] = max(3 * e, bn)
    return off


# --------------------------------------------------------------------------
# Pallas kernel: full encoder block, whole batch, one invocation, no grid.
# --------------------------------------------------------------------------
def _encoder_kernel(x_ref, p_ref, o_ref, *, batch, n_tokens, n_heads, head_dim):
    H, D = n_heads, head_dim
    E = H * D
    BN = batch * n_tokens
    L = _param_layout(BN, E)

    x = x_ref[...]                                        # (BN, E)

    # ---- unpack the single packed parameter array (all slices at col 0) ----
    w_qkv = p_ref[L['wqkv']:L['wqkv'] + E, 0:3 * E]       # (E, 3E)
    w_fc1 = p_ref[L['wfc1']:L['wfc1'] + E, 0:2 * E]       # (E, 2E)
    w_fc2 = p_ref[L['wfc2']:L['wfc2'] + 2 * E, 0:E]       # (2E, E)
    w_pro = p_ref[L['wpro']:L['wpro'] + E, 0:E]           # (E, E)
    neg_mask = p_ref[L['mask']:L['mask'] + BN, 0:BN]      # (BN, BN)
    gamma = p_ref[L['gamma']:L['gamma'] + 1, 0:E]         # (1, E)
    beta = p_ref[L['beta']:L['beta'] + 1, 0:E]            # (1, E)
    b_qkv = p_ref[L['bqkv']:L['bqkv'] + 1, 0:3 * E]       # (1, 3E)
    b_pro = p_ref[L['bpro']:L['bpro'] + 1, 0:E]           # (1, E)
    b_fc1 = p_ref[L['bfc1']:L['bfc1'] + 1, 0:2 * E]       # (1, 2E)
    b_fc2 = p_ref[L['bfc2']:L['bfc2'] + 1, 0:E]           # (1, E)

    def layernorm(v):
        # One-pass stats: the two reductions are independent (no mu -> var chain).
        mu = jnp.mean(v, axis=-1, keepdims=True)
        ms = jnp.mean(v * v, axis=-1, keepdims=True)
        var = ms - mu * mu
        return (v - mu) * jax.lax.rsqrt(var + LN_EPS) * gamma + beta

    # ---- multi-head self-attention -----------------------------------------
    x1 = layernorm(x)
    # Single full-width MXU pass for Q,K,V of all heads (Q pre-scaled by 1/sqrt(D)).
    qkv = jnp.dot(x1, w_qkv, preferred_element_type=jnp.float32) + b_qkv   # (BN, 3E)

    # Per-head D-wide contraction is inherent; keep it as 2-D NT dot_generals
    # (same MXU op count as a head-batched einsum, no in-kernel reshapes).
    dn = (((1,), (1,)), ((), ()))                          # q @ k^T
    energies = []
    for h in range(H):
        qh = qkv[:, h * D:(h + 1) * D]
        kh = qkv[:, E + h * D:E + (h + 1) * D]
        energies.append(jax.lax.dot_general(qh, kh, dn,
                                            preferred_element_type=jnp.float32))
    energy = jnp.stack(energies, axis=0) + neg_mask        # (H, BN, BN)

    # Softmax over keys, vectorized across heads.
    m = jnp.max(energy, axis=-1, keepdims=True)
    p = jnp.exp(energy - m)
    s = jnp.sum(p, axis=-1, keepdims=True)
    inv = pl.reciprocal(s, approx=True)                    # EUP vrcp ...
    inv = inv * (2.0 - s * inv)                            # ... + 1 Newton step
    att = p * inv                                          # (H, BN, BN)

    # Per-head att @ V, packed along lanes as '(h d)' -> ONE projection matmul.
    outs = []
    for h in range(H):
        vh = qkv[:, 2 * E + h * D:2 * E + (h + 1) * D]
        outs.append(jnp.dot(att[h], vh, preferred_element_type=jnp.float32))
    att_packed = jnp.concatenate(outs, axis=-1)            # (BN, E)

    att_out = jnp.dot(att_packed, w_pro,
                      preferred_element_type=jnp.float32) + b_pro
    x2 = x + att_out

    # ---- MLP ----------------------------------------------------------------
    x3 = layernorm(x2)
    h1 = jnp.dot(x3, w_fc1, preferred_element_type=jnp.float32) + b_fc1
    h1 = 0.5 * h1 * (1.0 + jax.lax.erf(h1 * INV_SQRT2))    # exact GELU
    mlp = jnp.dot(h1, w_fc2, preferred_element_type=jnp.float32) + b_fc2

    o_ref[...] = x2 + mlp
    # TODO(synk): if several encoder layers are stacked, fuse them into this
    # one pallas_call (all weights fit VMEM) to amortize launch/DMA cost.


# --------------------------------------------------------------------------
# Wrapper: single pallas_call, no grid, 2 input DMAs (x + packed params).
# --------------------------------------------------------------------------
def transformer_encoder(x, params):
    B, N, E = x.shape
    kernel = functools.partial(_encoder_kernel, batch=B, n_tokens=N,
                               n_heads=HEADS, head_dim=HEAD_DIM)
    x2d = x.reshape(B * N, E)                             # fold B,N for projections
    vmem = pl.BlockSpec(memory_space=pltpu.MemorySpace.VMEM)
    out2d = pl.pallas_call(
        kernel,
        out_shape=jax.ShapeDtypeStruct((B * N, E), x.dtype),
        in_specs=[vmem, vmem],
        out_specs=vmem,
    )(x2d, params)
    return out2d.reshape(B, N, E)


# --------------------------------------------------------------------------
# Pure-JAX reference mirroring the PyTorch module exactly (torch layouts).
# --------------------------------------------------------------------------
def reference_forward(x, tp):
    B, N, E = x.shape
    H, D = HEADS, HEAD_DIM

    def ln(v):
        mu = jnp.mean(v, axis=-1, keepdims=True)
        var = jnp.mean((v - mu) ** 2, axis=-1, keepdims=True)
        return (v - mu) / jnp.sqrt(var + LN_EPS) * tp['gamma'] + tp['beta']

    x1 = ln(x)
    qkv = x1 @ tp['W_qkv'].T + tp['b_qkv']                    # (B, N, 3E)
    qkv = qkv.reshape(B, N, H, D, 3)                          # '(h d qkv)' split
    qkv = jnp.transpose(qkv, (4, 0, 2, 1, 3))                 # qkv b h n d
    Q, K, V = qkv[0], qkv[1], qkv[2]
    energy = jnp.einsum('bhqd,bhkd->bhqk', Q, K) / SCALING
    att = jax.nn.softmax(energy, axis=-1)
    out = jnp.einsum('bhal,bhlv->bhav', att, V)
    out = jnp.transpose(out, (0, 2, 1, 3)).reshape(B, N, E)
    out = out @ tp['W_pro'].T + tp['b_pro']
    x2 = x + out
    x3 = ln(x2)
    h = x3 @ tp['W_fc1'].T + tp['b_fc1']
    h = 0.5 * h * (1.0 + jax.lax.erf(h * INV_SQRT2))
    mlp_out = h @ tp['W_fc2'].T + tp['b_fc2']
    return x2 + mlp_out


# --------------------------------------------------------------------------
# Deterministic parameters (torch layouts) + the single packed kernel array.
# --------------------------------------------------------------------------
def make_params(key, batch, n_tokens):
    ks = jax.random.split(key, 10)
    rnd = lambda k, s: 0.1 * jax.random.normal(k, s, dtype=jnp.float32)

    tp = {
        'gamma': 1.0 + rnd(ks[0], (EMB,)),
        'beta':  rnd(ks[1], (EMB,)),
        'W_qkv': rnd(ks[2], (3 * EMB, EMB)),   # torch Linear: (out, in)
        'b_qkv': rnd(ks[3], (3 * EMB,)),
        'W_pro': rnd(ks[4], (EMB, EMB)),
        'b_pro': rnd(ks[5], (EMB,)),
        'W_fc1': rnd(ks[6], (2 * EMB, EMB)),
        'b_fc1': rnd(ks[7], (2 * EMB,)),
        'W_fc2': rnd(ks[8], (EMB, 2 * EMB)),
        'b_fc2': rnd(ks[9], (EMB,)),
    }

    E = EMB
    BN = batch * n_tokens
    L = _param_layout(BN, E)

    # Unscramble torch's '(h d qkv)' column packing: column c = (h*D+d)*3 + which.
    Wqkv = np.asarray(tp['W_qkv'])
    bqkv = np.asarray(tp['b_qkv'])
    Wq, Wk, Wv = Wqkv[0::3], Wqkv[1::3], Wqkv[2::3]           # each (E, E)
    bq, bk, bv = bqkv[0::3], bqkv[1::3], bqkv[2::3]
    # Packed kernel weight: columns [Q|K|V], each ordered (h*D+d); Q pre-scaled.
    w_qkv_packed = np.concatenate([Wq.T / SCALING, Wk.T, Wv.T], axis=1)   # (E, 3E)
    b_qkv_packed = np.concatenate([bq / SCALING, bk, bv])                 # (3E,)

    params = np.zeros((L['rows'], L['cols']), np.float32)
    params[L['wqkv']:L['wqkv'] + E, 0:3 * E] = w_qkv_packed
    params[L['wfc1']:L['wfc1'] + E, 0:2 * E] = np.asarray(tp['W_fc1']).T
    params[L['wfc2']:L['wfc2'] + 2 * E, 0:E] = np.asarray(tp['W_fc2']).T
    params[L['wpro']:L['wpro'] + E, 0:E] = np.asarray(tp['W_pro']).T
    bid = np.arange(BN) // n_tokens
    params[L['mask']:L['mask'] + BN, 0:BN] = np.where(
        bid[:, None] == bid[None, :], 0.0, NEG_INF)
    params[L['gamma'], 0:E] = np.asarray(tp['gamma'])
    params[L['beta'], 0:E] = np.asarray(tp['beta'])
    params[L['bqkv'], 0:3 * E] = b_qkv_packed
    params[L['bpro'], 0:E] = np.asarray(tp['b_pro'])
    params[L['bfc1'], 0:2 * E] = np.asarray(tp['b_fc1'])
    params[L['bfc2'], 0:E] = np.asarray(tp['b_fc2'])

    return tp, jnp.asarray(params)


if __name__ == "__main__":
    B, N = 2, 8
    root = jax.random.PRNGKey(0)
    param_key, x_key = jax.random.split(root)

    tp, params = make_params(param_key, B, N)
    x = jax.random.normal(x_key, (B, N, EMB), dtype=jnp.float32)

    out = transformer_encoder(x, params)
    out = jax.block_until_ready(out)

    ref = reference_forward(x, tp)
    np.testing.assert_allclose(np.asarray(out), np.asarray(ref),
                               rtol=2e-4, atol=5e-5)
    print("KERNEL_OK")
</pallas_src>

<mosaic_0001>
module attributes {stable_mosaic.version = 11 : i64} {
  func.func @_encoder_kernel(%arg0: memref<16x16xf32, #tpu.memory_space<vmem>>, %arg1: memref<104x48xf32, #tpu.memory_space<vmem>>, %arg2: memref<16x16xf32, #tpu.memory_space<vmem>>) attributes {dimension_semantics = [], scalar_prefetch = 0 : i64, scratch_operands = 0 : i64, tpu.core_type = #tpu.core_type<tc>} {
    %c0 = arith.constant 0 : index
    %c0_0 = arith.constant 0 : index
    %0 = vector.load %arg0[%c0, %c0_0] : memref<16x16xf32, #tpu.memory_space<vmem>>, vector<16x16xf32>
    %c0_1 = arith.constant 0 : index
    %c0_2 = arith.constant 0 : index
    %1 = vector.load %arg1[%c0_1, %c0_2] : memref<104x48xf32, #tpu.memory_space<vmem>>, vector<16x48xf32>
    %c16 = arith.constant 16 : index
    %c0_3 = arith.constant 0 : index
    %2 = vector.load %arg1[%c16, %c0_3] : memref<104x48xf32, #tpu.memory_space<vmem>>, vector<16x32xf32>
    %c32 = arith.constant 32 : index
    %c0_4 = arith.constant 0 : index
    %3 = vector.load %arg1[%c32, %c0_4] : memref<104x48xf32, #tpu.memory_space<vmem>>, vector<32x16xf32>
    %c64 = arith.constant 64 : index
    %c0_5 = arith.constant 0 : index
    %4 = vector.load %arg1[%c64, %c0_5] : memref<104x48xf32, #tpu.memory_space<vmem>>, vector<16x16xf32>
    %c80 = arith.constant 80 : index
    %c0_6 = arith.constant 0 : index
    %5 = vector.load %arg1[%c80, %c0_6] : memref<104x48xf32, #tpu.memory_space<vmem>>, vector<16x16xf32>
    %c96 = arith.constant 96 : index
    %c0_7 = arith.constant 0 : index
    %6 = vector.load %arg1[%c96, %c0_7] : memref<104x48xf32, #tpu.memory_space<vmem>>, vector<1x16xf32>
    %c97 = arith.constant 97 : index
    %c0_8 = arith.constant 0 : index
    %7 = vector.load %arg1[%c97, %c0_8] : memref<104x48xf32, #tpu.memory_space<vmem>>, vector<1x16xf32>
    %c98 = arith.constant 98 : index
    %c0_9 = arith.constant 0 : index
    %8 = vector.load %arg1[%c98, %c0_9] : memref<104x48xf32, #tpu.memory_space<vmem>>, vector<1x48xf32>
    %c99 = arith.constant 99 : index
    %c0_10 = arith.constant 0 : index
    %9 = vector.load %arg1[%c99, %c0_10] : memref<104x48xf32, #tpu.memory_space<vmem>>, vector<1x16xf32>
    %c100 = arith.constant 100 : index
    %c0_11 = arith.constant 0 : index
    %10 = vector.load %arg1[%c100, %c0_11] : memref<104x48xf32, #tpu.memory_space<vmem>>, vector<1x32xf32>
    %c101 = arith.constant 101 : index
    %c0_12 = arith.constant 0 : index
    %11 = vector.load %arg1[%c101, %c0_12] : memref<104x48xf32, #tpu.memory_space<vmem>>, vector<1x16xf32>
    %cst = arith.constant dense<0.000000e+00> : vector<16xf32>
    %12 = vector.multi_reduction <add>, %0, %cst [1] : vector<16x16xf32> to vector<16xf32>
    %13 = vector.shape_cast %12 : vector<16xf32> to vector<16x1xf32>
    %cst_13 = arith.constant 1.600000e+01 : f32
    %14 = vector.broadcast %cst_13 : f32 to vector<16x1xf32>
    %15 = arith.divf %13, %14 : vector<16x1xf32>
    %16 = arith.mulf %0, %0 : vector<16x16xf32>
    %cst_14 = arith.constant dense<0.000000e+00> : vector<16xf32>
    %17 = vector.multi_reduction <add>, %16, %cst_14 [1] : vector<16x16xf32> to vector<16xf32>
    %18 = vector.shape_cast %17 : vector<16xf32> to vector<16x1xf32>
    %cst_15 = arith.constant 1.600000e+01 : f32
    %19 = vector.broadcast %cst_15 : f32 to vector<16x1xf32>
    %20 = arith.divf %18, %19 : vector<16x1xf32>
    %21 = arith.mulf %15, %15 : vector<16x1xf32>
    %22 = arith.subf %20, %21 : vector<16x1xf32>
    %23 = vector.broadcast %15 : vector<16x1xf32> to vector<16x16xf32>
    %24 = arith.subf %0, %23 : vector<16x16xf32>
    %cst_16 = arith.constant 9.99999974E-6 : f32
    %25 = vector.broadcast %cst_16 : f32 to vector<16x1xf32>
    %26 = arith.addf %22, %25 : vector<16x1xf32>
    %27 = math.rsqrt %26 : vector<16x1xf32>
    %28 = vector.broadcast %27 : vector<16x1xf32> to vector<16x16xf32>
    %29 = arith.mulf %24, %28 : vector<16x16xf32>
    %30 = vector.broadcast %6 : vector<1x16xf32> to vector<16x16xf32>
    %31 = arith.mulf %29, %30 : vector<16x16xf32>
    %32 = vector.broadcast %7 : vector<1x16xf32> to vector<16x16xf32>
    %33 = arith.addf %31, %32 : vector<16x16xf32>
    %cst_17 = arith.constant dense<0.000000e+00> : vector<16x48xf32>
    %34 = tpu.matmul %33, %1, %cst_17 {dimension_numbers = #tpu.dot_dimension_numbers<[1], [0], [0], [1], [0, 0, 1, 1], [], []>} : vector<16x16xf32>, vector<16x48xf32>, vector<16x48xf32> -> vector<16x48xf32>
    %35 = vector.broadcast %8 : vector<1x48xf32> to vector<16x48xf32>
    %36 = arith.addf %34, %35 : vector<16x48xf32>
    %37 = vector.extract_strided_slice %36 {offsets = [0, 0], sizes = [16, 4], strides = [1, 1]} : vector<16x48xf32> to vector<16x4xf32>
    %38 = vector.extract_strided_slice %36 {offsets = [0, 16], sizes = [16, 4], strides = [1, 1]} : vector<16x48xf32> to vector<16x4xf32>
    %cst_18 = arith.constant dense<0.000000e+00> : vector<16x16xf32>
    %39 = tpu.matmul %37, %38, %cst_18 {dimension_numbers = #tpu.dot_dimension_numbers<[1], [1], [0], [0], [0, 0, 1, 0], [], []>} : vector<16x4xf32>, vector<16x4xf32>, vector<16x16xf32> -> vector<16x16xf32>
    %40 = vector.extract_strided_slice %36 {offsets = [0, 4], sizes = [16, 4], strides = [1, 1]} : vector<16x48xf32> to vector<16x4xf32>
    %41 = vector.extract_strided_slice %36 {offsets = [0, 20], sizes = [16, 4], strides = [1, 1]} : vector<16x48xf32> to vector<16x4xf32>
    %cst_19 = arith.constant dense<0.000000e+00> : vector<16x16xf32>
    %42 = tpu.matmul %40, %41, %cst_19 {dimension_numbers = #tpu.dot_dimension_numbers<[1], [1], [0], [0], [0, 0, 1, 0], [], []>} : vector<16x4xf32>, vector<16x4xf32>, vector<16x16xf32> -> vector<16x16xf32>
    %43 = vector.extract_strided_slice %36 {offsets = [0, 8], sizes = [16, 4], strides = [1, 1]} : vector<16x48xf32> to vector<16x4xf32>
    %44 = vector.extract_strided_slice %36 {offsets = [0, 24], sizes = [16, 4], strides = [1, 1]} : vector<16x48xf32> to vector<16x4xf32>
    %cst_20 = arith.constant dense<0.000000e+00> : vector<16x16xf32>
    %45 = tpu.matmul %43, %44, %cst_20 {dimension_numbers = #tpu.dot_dimension_numbers<[1], [1], [0], [0], [0, 0, 1, 0], [], []>} : vector<16x4xf32>, vector<16x4xf32>, vector<16x16xf32> -> vector<16x16xf32>
    %46 = vector.extract_strided_slice %36 {offsets = [0, 12], sizes = [16, 4], strides = [1, 1]} : vector<16x48xf32> to vector<16x4xf32>
    %47 = vector.extract_strided_slice %36 {offsets = [0, 28], sizes = [16, 4], strides = [1, 1]} : vector<16x48xf32> to vector<16x4xf32>
    %cst_21 = arith.constant dense<0.000000e+00> : vector<16x16xf32>
    %48 = tpu.matmul %46, %47, %cst_21 {dimension_numbers = #tpu.dot_dimension_numbers<[1], [1], [0], [0], [0, 0, 1, 0], [], []>} : vector<16x4xf32>, vector<16x4xf32>, vector<16x16xf32> -> vector<16x16xf32>
    %49 = vector.shape_cast %39 : vector<16x16xf32> to vector<1x16x16xf32>
    %50 = vector.shape_cast %42 : vector<16x16xf32> to vector<1x16x16xf32>
    %51 = vector.shape_cast %45 : vector<16x16xf32> to vector<1x16x16xf32>
    %52 = vector.shape_cast %48 : vector<16x16xf32> to vector<1x16x16xf32>
    %53 = tpu.concatenate %49, %50, %51, %52 in 0 : vector<1x16x16xf32>, vector<1x16x16xf32>, vector<1x16x16xf32>, vector<1x16x16xf32> -> vector<4x16x16xf32>
    %54 = vector.shape_cast %5 : vector<16x16xf32> to vector<1x16x16xf32>
    %55 = vector.broadcast %54 : vector<1x16x16xf32> to vector<4x16x16xf32>
    %56 = arith.addf %53, %55 : vector<4x16x16xf32>
    %cst_22 = arith.constant dense<0xFF800000> : vector<4x16xf32>
    %57 = vector.multi_reduction <maximumf>, %56, %cst_22 [2] : vector<4x16x16xf32> to vector<4x16xf32>
    %58 = vector.shape_cast %57 : vector<4x16xf32> to vector<4x16x1xf32>
    %59 = vector.broadcast %58 : vector<4x16x1xf32> to vector<4x16x16xf32>
    %60 = arith.subf %56, %59 : vector<4x16x16xf32>
    %61 = math.exp %60 : vector<4x16x16xf32>
    %cst_23 = arith.constant dense<0.000000e+00> : vector<4x16xf32>
    %62 = vector.multi_reduction <add>, %61, %cst_23 [2] : vector<4x16x16xf32> to vector<4x16xf32>
    %63 = vector.shape_cast %62 : vector<4x16xf32> to vector<4x16x1xf32>
    %64 = tpu.reciprocal %63 {approx = true} : vector<4x16x1xf32> -> vector<4x16x1xf32>
    %65 = arith.mulf %63, %64 : vector<4x16x1xf32>
    %cst_24 = arith.constant 2.000000e+00 : f32
    %66 = vector.broadcast %cst_24 : f32 to vector<4x16x1xf32>
    %67 = arith.subf %66, %65 : vector<4x16x1xf32>
    %68 = arith.mulf %64, %67 : vector<4x16x1xf32>
    %69 = vector.broadcast %68 : vector<4x16x1xf32> to vector<4x16x16xf32>
    %70 = arith.mulf %61, %69 : vector<4x16x16xf32>
    %71 = vector.extract_strided_slice %36 {offsets = [0, 32], sizes = [16, 4], strides = [1, 1]} : vector<16x48xf32> to vector<16x4xf32>
    %72 = vector.extract_strided_slice %70 {offsets = [0, 0, 0], sizes = [1, 16, 16], strides = [1, 1, 1]} : vector<4x16x16xf32> to vector<1x16x16xf32>
    %73 = vector.shape_cast %72 : vector<1x16x16xf32> to vector<16x16xf32>
    %cst_25 = arith.constant dense<0.000000e+00> : vector<16x4xf32>
    %74 = tpu.matmul %73, %71, %cst_25 {dimension_numbers = #tpu.dot_dimension_numbers<[1], [0], [0], [1], [0, 0, 1, 1], [], []>} : vector<16x16xf32>, vector<16x4xf32>, vector<16x4xf32> -> vector<16x4xf32>
    %75 = vector.extract_strided_slice %36 {offsets = [0, 36], sizes = [16, 4], strides = [1, 1]} : vector<16x48xf32> to vector<16x4xf32>
    %76 = vector.extract_strided_slice %70 {offsets = [1, 0, 0], sizes = [1, 16, 16], strides = [1, 1, 1]} : vector<4x16x16xf32> to vector<1x16x16xf32>
    %77 = vector.shape_cast %76 : vector<1x16x16xf32> to vector<16x16xf32>
    %cst_26 = arith.constant dense<0.000000e+00> : vector<16x4xf32>
    %78 = tpu.matmul %77, %75, %cst_26 {dimension_numbers = #tpu.dot_dimension_numbers<[1], [0], [0], [1], [0, 0, 1, 1], [], []>} : vector<16x16xf32>, vector<16x4xf32>, vector<16x4xf32> -> vector<16x4xf32>
    %79 = vector.extract_strided_slice %36 {offsets = [0, 40], sizes = [16, 4], strides = [1, 1]} : vector<16x48xf32> to vector<16x4xf32>
    %80 = vector.extract_strided_slice %70 {offsets = [2, 0, 0], sizes = [1, 16, 16], strides = [1, 1, 1]} : vector<4x16x16xf32> to vector<1x16x16xf32>
    %81 = vector.shape_cast %80 : vector<1x16x16xf32> to vector<16x16xf32>
    %cst_27 = arith.constant dense<0.000000e+00> : vector<16x4xf32>
    %82 = tpu.matmul %81, %79, %cst_27 {dimension_numbers = #tpu.dot_dimension_numbers<[1], [0], [0], [1], [0, 0, 1, 1], [], []>} : vector<16x16xf32>, vector<16x4xf32>, vector<16x4xf32> -> vector<16x4xf32>
    %83 = vector.extract_strided_slice %36 {offsets = [0, 44], sizes = [16, 4], strides = [1, 1]} : vector<16x48xf32> to vector<16x4xf32>
    %84 = vector.extract_strided_slice %70 {offsets = [3, 0, 0], sizes = [1, 16, 16], strides = [1, 1, 1]} : vector<4x16x16xf32> to vector<1x16x16xf32>
    %85 = vector.shape_cast %84 : vector<1x16x16xf32> to vector<16x16xf32>
    %cst_28 = arith.constant dense<0.000000e+00> : vector<16x4xf32>
    %86 = tpu.matmul %85, %83, %cst_28 {dimension_numbers = #tpu.dot_dimension_numbers<[1], [0], [0], [1], [0, 0, 1, 1], [], []>} : vector<16x16xf32>, vector<16x4xf32>, vector<16x4xf32> -> vector<16x4xf32>
    %87 = tpu.concatenate %74, %78, %82, %86 in 1 : vector<16x4xf32>, vector<16x4xf32>, vector<16x4xf32>, vector<16x4xf32> -> vector<16x16xf32>
    %cst_29 = arith.constant dense<0.000000e+00> : vector<16x16xf32>
    %88 = tpu.matmul %87, %4, %cst_29 {dimension_numbers = #tpu.dot_dimension_numbers<[1], [0], [0], [1], [0, 0, 1, 1], [], []>} : vector<16x16xf32>, vector<16x16xf32>, vector<16x16xf32> -> vector<16x16xf32>
    %89 = vector.broadcast %9 : vector<1x16xf32> to vector<16x16xf32>
    %90 = arith.addf %88, %89 : vector<16x16xf32>
    %91 = arith.addf %0, %90 : vector<16x16xf32>
    %cst_30 = arith.constant dense<0.000000e+00> : vector<16xf32>
    %92 = vector.multi_reduction <add>, %91, %cst_30 [1] : vector<16x16xf32> to vector<16xf32>
    %93 = vector.shape_cast %92 : vector<16xf32> to vector<16x1xf32>
    %cst_31 = arith.constant 1.600000e+01 : f32
    %94 = vector.broadcast %cst_31 : f32 to vector<16x1xf32>
    %95 = arith.divf %93, %94 : vector<16x1xf32>
    %96 = arith.mulf %91, %91 : vector<16x16xf32>
    %cst_32 = arith.constant dense<0.000000e+00> : vector<16xf32>
    %97 = vector.multi_reduction <add>, %96, %cst_32 [1] : vector<16x16xf32> to vector<16xf32>
    %98 = vector.shape_cast %97 : vector<16xf32> to vector<16x1xf32>
    %cst_33 = arith.constant 1.600000e+01 : f32
    %99 = vector.broadcast %cst_33 : f32 to vector<16x1xf32>
    %100 = arith.divf %98, %99 : vector<16x1xf32>
    %101 = arith.mulf %95, %95 : vector<16x1xf32>
    %102 = arith.subf %100, %101 : vector<16x1xf32>
    %103 = vector.broadcast %95 : vector<16x1xf32> to vector<16x16xf32>
    %104 = arith.subf %91, %103 : vector<16x16xf32>
    %cst_34 = arith.constant 9.99999974E-6 : f32
    %105 = vector.broadcast %cst_34 : f32 to vector<16x1xf32>
    %106 = arith.addf %102, %105 : vector<16x1xf32>
    %107 = math.rsqrt %106 : vector<16x1xf32>
    %108 = vector.broadcast %107 : vector<16x1xf32> to vector<16x16xf32>
    %109 = arith.mulf %104, %108 : vector<16x16xf32>
    %110 = vector.broadcast %6 : vector<1x16xf32> to vector<16x16xf32>
    %111 = arith.mulf %109, %110 : vector<16x16xf32>
    %112 = vector.broadcast %7 : vector<1x16xf32> to vector<16x16xf32>
    %113 = arith.addf %111, %112 : vector<16x16xf32>
    %cst_35 = arith.constant dense<0.000000e+00> : vector<16x32xf32>
    %114 = tpu.matmul %113, %2, %cst_35 {dimension_numbers = #tpu.dot_dimension_numbers<[1], [0], [0], [1], [0, 0, 1, 1], [], []>} : vector<16x16xf32>, vector<16x32xf32>, vector<16x32xf32> -> vector<16x32xf32>
    %115 = vector.broadcast %10 : vector<1x32xf32> to vector<16x32xf32>
    %116 = arith.addf %114, %115 : vector<16x32xf32>
    %cst_36 = arith.constant 5.000000e-01 : f32
    %117 = vector.broadcast %cst_36 : f32 to vector<16x32xf32>
    %118 = arith.mulf %117, %116 : vector<16x32xf32>
    %cst_37 = arith.constant 0.707106769 : f32
    %119 = vector.broadcast %cst_37 : f32 to vector<16x32xf32>
    %120 = arith.mulf %116, %119 : vector<16x32xf32>
    %121 = math.erf %120 : vector<16x32xf32>
    %cst_38 = arith.constant 1.000000e+00 : f32
    %122 = vector.broadcast %cst_38 : f32 to vector<16x32xf32>
    %123 = arith.addf %122, %121 : vector<16x32xf32>
    %124 = arith.mulf %118, %123 : vector<16x32xf32>
    %cst_39 = arith.constant dense<0.000000e+00> : vector<16x16xf32>
    %125 = tpu.matmul %124, %3, %cst_39 {dimension_numbers = #tpu.dot_dimension_numbers<[1], [0], [0], [1], [0, 0, 1, 1], [], []>} : vector<16x32xf32>, vector<32x16xf32>, vector<16x16xf32> -> vector<16x16xf32>
    %126 = vector.broadcast %11 : vector<1x16xf32> to vector<16x16xf32>
    %127 = arith.addf %125, %126 : vector<16x16xf32>
    %128 = arith.addf %91, %127 : vector<16x16xf32>
    %c0_40 = arith.constant 0 : index
    %c0_41 = arith.constant 0 : index
    %129 = vector.load %arg2[%c0_40, %c0_41] : memref<16x16xf32, #tpu.memory_space<vmem>>, vector<16x16xf32>
    tpu.vector_store %arg2[%c0_40, %c0_41], %128 {strides = array<i32>} : memref<16x16xf32, #tpu.memory_space<vmem>>, vector<16x16xf32>,
    return
  }
}

</mosaic_0001>

<bundles_post_ra>
// kernel: tpu_custom_call.1
= control target key start
LH: loop header
LB: loop body
LE: loop exit
PB: predicated region body
PF: predicated region fallthrough
CT: control target
= control target key end

     0   :  { %vm32_vm0 = vcmask 130048   ;;  %s1966_s0 = inlined_call_operand.vmem [shape: f32[16,16], index: 0, kind: input, shape index: {}]   ;;  %s1967_s1 = inlined_call_operand.vmem [shape: f32[104,48], index: 1, kind: input, shape index: {}]   ;;  %s1968_s2 = inlined_call_operand.hbm [shape: f32[16,16], index: 2, kind: output, shape index: {}]  }
   0x1   :  { %v1740_v0 = vld [vmem:[%s1966_s0] sm:$0xff]  ;;  %v1745_v1 = vld [vmem:[%s1966_s0 + $0x8] sm:$0xff] }
   0x2   :  { %7 = vsyncpa [#allocation3], 0  ;;  %v33_v2 = vsel %vm32_vm0, %v1740_v0, 0.0  ;;  %v42_v3 = vmul.f32 %v1740_v0, %v1740_v0  ;;  %v43_v4 = vmul.f32 %v1745_v1, %v1745_v1  ;;  %v36_v6 = vsel %vm32_vm0, %v1745_v1, 0.0  ;;  %v14_v8 = vld [vmem:[%s1967_s1] sm:$0xff]  ;;  %v15_v9 = vld [vmem:[%s1967_s1 + $0x8] sm:$0xff] }
   0x3   :  { %34 = vadd.xlane.f32.xlu0 %v33_v2  ;;  %v1522_v10 = vpack.c.bf16 %v15_v9, %v14_v8  ;;  %v1767_v27 = vld [vmem:[%s1967_s1 + $0x60] ss:$0 sm:$0xff]  ;;  %v1772_v29 = vld [vmem:[%s1967_s1 + $0x61] ss:$0 sm:$0xff]  ;;  %v1348_v37 = vld [vmem:[%s1967_s1 + $0x62] ss:$0 sm:$0xff] }
   0x4   :  { %v44_v5 = vsel %vm32_vm0, %v42_v3, 0.0  ;;  %v47_v7 = vsel %vm32_vm0, %v43_v4, 0.0  ;;  %vm167_vm1 = vcmask 31744   ;;  %s1706_s22 = smov 108   ;;  %s1707_s23 = smov 112   ;;  %v25_v4 = vld [vmem:[%s1967_s1 + $0x58] sm:$0xff] }
   0x5   :  { %45 = vadd.xlane.f32.xlu1 %v44_v5  ;;  %1523 = vmatprep.subr.bf16.mxu0 %v1522_v10  ;;  %s1708_s24 = smov 104   ;;  %s1709_s25 = smov 124   ;;  %vm1793_vm2 = vmpackc.low %vm167_vm1, %vm167_vm1  ;;  %v24_v8 = vld [vmem:[%s1967_s1 + $0x50] sm:$0xff]  ;;  %vm1018_vm3 = vcmask 64512   ;;  %vm1021_vm4 = vcmask 97280   ;;  %vm1244_vm5 = vcmask 261120  }
   0x6   :  { %1525 = vmatpush3.bf16.msra.mxu0 %v1522_v10  ;;  %s1710_s26 = smov 100   ;;  %s1711_s27 = smov 120  }
   0x7   :  { %37 = vadd.xlane.f32.xlu0 %v36_v6  ;;  %s1712_s28 = smov 116   ;;  %s1713_s5 = smov 92  }
   0x8   :  { %s1714_s6 = smov 88   ;;  %s1715_s7 = smov 84  }
   0x9   :  { %48 = vadd.xlane.f32.xlu1 %v47_v7  ;;  %s1716_s8 = smov 96   ;;  %s1717_s0 = smov 4  }
   0xa   :  { %s1718_s13 = smov 8   ;;  %s1719_s14 = smov 12  }
  0x90   :  { %v35_v11 = vpop.xlane.xlu0 %34 }
  0x91   :  { %v40_v12 = vmul.f32 0.0625, %v35_v11 }
  0x92   :  { %v46_v13 = vpop.xlane.xlu1 %45 }
  0x93   :  { %v52_v14 = vmul.f32 %v40_v12, %v40_v12  ;;  %v50_v15 = vmul.f32 0.0625, %v46_v13  ;;  %v56_v25 = vsub.f32 %v1740_v0, %v40_v12 }
  0x94   :  { %v38_v16 = vpop.xlane.xlu0 %37 }
  0x95   :  { %v54_v17 = vsub.f32 %v50_v15, %v52_v14  ;;  %v41_v18 = vmul.f32 0.0625, %v38_v16 }
  0x96   :  { %v49_v19 = vpop.xlane.xlu1 %48 }
  0x97   :  { %v58_v20 = vadd.f32 1e-05, %v54_v17  ;;  %v53_v21 = vmul.f32 %v41_v18, %v41_v18  ;;  %v51_v22 = vmul.f32 0.0625, %v49_v19  ;;  %v57_v30 = vsub.f32 %v1745_v1, %v41_v18 }
  0x99   :  { %1638 = vrsqrt.f32 %v58_v20  ;;  %v55_v23 = vsub.f32 %v51_v22, %v53_v21 }
  0x9b   :  { %v59_v24 = vadd.f32 1e-05, %v55_v23 }
  0x9d   :  { %1640 = vrsqrt.f32 %v59_v24 }
  0xa3   :  { %v1639_v26 = vpop.eup %1638 }
  0xa4   :  { %v62_v28 = vmul.f32 %v1639_v26, %v56_v25 }
  0xa6   :  { %v68_v31 = vmul.f32 %v1767_v27, %v62_v28 }
  0xa7   :  { %v1641_v32 = vpop.eup %1640 }
  0xa8   :  { %v74_v33 = vadd.f32 %v1772_v29, %v68_v31  ;;  %v63_v34 = vmul.f32 %v1641_v32, %v57_v30 }
  0xaa   :  { %1438 = vmatprep.mubr.msk.f32.mxu0 %vm32_vm0, %v74_v33  ;;  %v69_v35 = vmul.f32 %v1767_v27, %v63_v34 }
  0xac   :  { %v75_v36 = vadd.f32 %v1772_v29, %v69_v35 }
  0xae   :  { %1439 = vmatmul.mubr.msk.f32.vlgmr.msra.gmra.mrb[0].mxu0 %vm32_vm0, %v75_v36 }
 0x181   :  { %v1440_v38 = vpop.f32.mrb[0].mxu0 }
 0x182   :  { %v158_v39 = vadd.f32 %v1440_v38, %v1348_v37  ;;  %v152_v40 = vpop.f32.mrb[1].mxu0 }
 0x183   :  { %v153_v41 = vadd.f32 %v1348_v37, %v152_v40 }
 0x185   :  { %1445 = vmatprep.mubr.msk.f32.mxu1 %vm167_vm1, %v153_v41  ;;  %v1785_v42 = vpack.i.bf16 %v158_v39, %v153_v41 }
 0x187   :  { %1604 = vrot.lane.b32.xlu1 %v1785_v42, %s1706_s22  ;;  %1599 = vrot.lane.b32.xlu0 %v1785_v42, %s1707_s23 }
 0x18b   :  { %1609 = vrot.lane.b32.xlu1 %v1785_v42, %s1708_s24  ;;  %251 = vrot.lane.b32.xlu0 %v153_v41, %s1709_s25 }
 0x18f   :  { %1614 = vrot.lane.b32.xlu1 %v1785_v42, %s1710_s26  ;;  %342 = vrot.lane.b32.xlu0 %v153_v41, %s1711_s27 }
 0x193   :  { %253 = vrot.lane.b32.xlu1 %v158_v39, %s1709_s25  ;;  %433 = vrot.lane.b32.xlu0 %v153_v41, %s1712_s28 }
 0x197   :  { %344 = vrot.lane.b32.xlu1 %v158_v39, %s1711_s27 }
 0x19b   :  { %435 = vrot.lane.b32.xlu1 %v158_v39, %s1712_s28 }
 0x1f9   :  { %v1605_v43 = vpop.permute.xlu1 %1604  ;;  %v1600_v44 = vpop.permute.xlu0 %1599 }
 0x1fa   :  { %v1607_v45 = vunpack.i.h.bf16 %v1605_v43  ;;  %v1606_v46 = vunpack.i.l.bf16 %v1605_v43  ;;  %v1602_v47 = vunpack.i.h.bf16 %v1600_v44  ;;  %v1601_v48 = vunpack.i.l.bf16 %v1600_v44 }
 0x1fc   :  { %v1532_v50 = vpack.c.bf16 %v1607_v45, %v1606_v46  ;;  %v1526_v51 = vpack.c.bf16 %v1602_v47, %v1601_v48 }
 0x1fd   :  { %v1610_v52 = vpop.permute.xlu1 %1609  ;;  %v252_v53 = vpop.permute.xlu0 %251 }
 0x1fe   :  { %v1612_v54 = vunpack.i.h.bf16 %v1610_v52  ;;  %v1611_v55 = vunpack.i.l.bf16 %v1610_v52  ;;  %1528 = vmatprep.subr.msk.bf16.mxu1 %vm1793_vm2, %v1526_v51  ;;  %1534 = vmatprep.subr.msk.bf16.mxu0 %vm1793_vm2, %v1532_v50 }
 0x1ff   :  { %1452 = vmatprep.mubr.msk.f32.mxu0 %vm167_vm1, %v252_v53  ;;  %1531 = vmatpush3.bf16.xpose.msk.msra.mxu1 %vm1793_vm2, %v1526_v51 }
 0x200   :  { %v1538_v56 = vpack.c.bf16 %v1612_v54, %v1611_v55  ;;  %1537 = vmatpush3.bf16.xpose.msk.msra.mxu0 %vm1793_vm2, %v1532_v50 }
 0x201   :  { %v1615_v57 = vpop.permute.xlu1 %1614  ;;  %v343_v58 = vpop.permute.xlu0 %342 }
 0x202   :  { %v1617_v59 = vunpack.i.h.bf16 %v1615_v57  ;;  %v1616_v60 = vunpack.i.l.bf16 %v1615_v57  ;;  %1540 = vmatprep.subr.msk.bf16.mxu1 %vm1793_vm2, %v1538_v56 }
 0x204   :  { %v1544_v61 = vpack.c.bf16 %v1617_v59, %v1616_v60 }
 0x205   :  { %v254_v62 = vpop.permute.xlu1 %253  ;;  %v434_v63 = vpop.permute.xlu0 %433 }
 0x206   :  { %1446 = vmatmul.mubr.msk.f32.vlgmr.msra.gmra.mrb[0].mxu1 %vm167_vm1, %v158_v39  ;;  %1546 = vmatprep.subr.msk.bf16.mxu0 %vm1793_vm2, %v1544_v61 }
 0x207   :  { %1453 = vmatmul.mubr.msk.f32.vlgmr.msra.gmra.mrb[2].mxu0 %vm167_vm1, %v254_v62  ;;  %1543 = vmatpush3.bf16.xpose.msk.msra.mxu1 %vm1793_vm2, %v1538_v56 }
 0x208   :  { %1459 = vmatprep.mubr.msk.f32.mxu1 %vm167_vm1, %v343_v58  ;;  %1549 = vmatpush3.bf16.xpose.msk.msra.mxu0 %vm1793_vm2, %v1544_v61 }
 0x209   :  { %1466 = vmatprep.mubr.msk.f32.mxu0 %vm167_vm1, %v434_v63  ;;  %v345_v2 = vpop.permute.xlu1 %344 }
 0x20d   :  { %v436_v3 = vpop.permute.xlu1 %435 }
 0x20e   :  { %1460 = vmatmul.mubr.msk.f32.vlgmr.msra.gmra.mrb[2].mxu1 %vm167_vm1, %v345_v2 }
 0x20f   :  { %1467 = vmatmul.mubr.msk.f32.vlgmr.msra.gmra.mrb[4].mxu0 %vm167_vm1, %v436_v3 }
 0x2d9   :  { %v1447_v5 = vpop.f32.mrb[0].mxu1 }
 0x2da   :  { %v525_v6 = vadd.f32 %v1447_v5, %v25_v4  ;;  %v1454_v7 = vpop.f32.mrb[2].mxu0  ;;  %v242_v9 = vpop.f32.mrb[1].mxu1 }
 0x2db   :  { %v527_v10 = vadd.f32 %v1454_v7, %v25_v4  ;;  %v333_v11 = vpop.f32.mrb[3].mxu0  ;;  %v524_v13 = vadd.f32 %v242_v9, %v24_v8 }
 0x2dc   :  { %v535_v12 = vsel %vm32_vm0, %v525_v6, -inf  ;;  %v526_v15 = vadd.f32 %v333_v11, %v24_v8 }
 0x2dd   :  { %v541_v14 = vsel %vm32_vm0, %v527_v10, -inf  ;;  %536 = vmax.xlane.f32.xlu1 %v535_v12  ;;  %v532_v16 = vsel %vm32_vm0, %v524_v13, -inf }
 0x2de   :  { %542 = vmax.xlane.f32.xlu0 %v541_v14  ;;  %v538_v25 = vsel %vm32_vm0, %v526_v15, -inf }
 0x2e1   :  { %v1461_v17 = vpop.f32.mrb[2].mxu1 }
 0x2e2   :  { %v1468_v18 = vpop.f32.mrb[4].mxu0  ;;  %533 = vmax.xlane.f32.xlu0 %v532_v16  ;;  %v529_v19 = vadd.f32 %v1461_v17, %v25_v4  ;;  %v424_v20 = vpop.f32.mrb[3].mxu1 }
 0x2e3   :  { %v515_v21 = vpop.f32.mrb[5].mxu0  ;;  %v531_v22 = vadd.f32 %v1468_v18, %v25_v4  ;;  %v528_v24 = vadd.f32 %v424_v20, %v24_v8 }
 0x2e4   :  { %v547_v23 = vsel %vm32_vm0, %v529_v19, -inf  ;;  %v530_v28 = vadd.f32 %v515_v21, %v24_v8 }
 0x2e5   :  { %548 = vmax.xlane.f32.xlu1 %v547_v23  ;;  %v553_v26 = vsel %vm32_vm0, %v531_v22, -inf  ;;  %v544_v30 = vsel %vm32_vm0, %v528_v24, -inf }
 0x2e6   :  { %539 = vmax.xlane.f32.xlu0 %v538_v25  ;;  %v550_v31 = vsel %vm32_vm0, %v530_v28, -inf }
 0x2e9   :  { %554 = vmax.xlane.f32.xlu1 %v553_v26 }
 0x2ea   :  { %545 = vmax.xlane.f32.xlu0 %v544_v30 }
 0x2ee   :  { %551 = vmax.xlane.f32.xlu0 %v550_v31 }
 0x36a   :  { %v537_v32 = vpop.xlane.xlu1 %536 }
 0x36b   :  { %v543_v33 = vpop.xlane.xlu0 %542  ;;  %v557_v34 = vsub.f32 %v525_v6, %v537_v32 }
 0x36c   :  { %v559_v35 = vsub.f32 %v527_v10, %v543_v33 }
 0x36d   :  { %v566_v36 = vmul.f32 1.442695, %v557_v34 }
 0x36e   :  { %v570_v37 = vmul.f32 1.442695, %v559_v35 }
 0x36f   :  { %1642 = vpow2.f32 %v566_v36  ;;  %v534_v38 = vpop.xlane.xlu0 %533 }
 0x370   :  { %v556_v39 = vsub.f32 %v524_v13, %v534_v38  ;;  %1644 = vpow2.f32 %v570_v37 }
 0x372   :  { %v564_v40 = vmul.f32 1.442695, %v556_v39  ;;  %v549_v41 = vpop.xlane.xlu1 %548 }
 0x373   :  { %v540_v43 = vpop.xlane.xlu0 %539  ;;  %v561_v44 = vsub.f32 %v529_v19, %v549_v41 }
 0x374   :  { %1646 = vpow2.f32 %v564_v40  ;;  %v558_v45 = vsub.f32 %v526_v15, %v540_v43 }
 0x375   :  { %v574_v46 = vmul.f32 1.442695, %v561_v44 }
 0x376   :  { %v568_v47 = vmul.f32 1.442695, %v558_v45  ;;  %v555_v48 = vpop.xlane.xlu1 %554 }
 0x377   :  { %1648 = vpow2.f32 %v574_v46  ;;  %v563_v49 = vsub.f32 %v531_v22, %v555_v48  ;;  %v546_v50 = vpop.xlane.xlu0 %545 }
 0x378   :  { %1650 = vpow2.f32 %v568_v47  ;;  %v560_v51 = vsub.f32 %v528_v24, %v546_v50 }
 0x379   :  { %v1834_v52 = vpop.eup %1642  ;;  %v578_v53 = vmul.f32 1.442695, %v563_v49 }
 0x37a   :  { %v572_v54 = vmul.f32 1.442695, %v560_v51  ;;  %v583_v55 = vsel %vm32_vm0, %v1834_v52, 0.0  ;;  %v1838_v56 = vpop.eup %1644 }
 0x37b   :  { %1652 = vpow2.f32 %v578_v53  ;;  %v552_v57 = vpop.xlane.xlu0 %551  ;;  %584 = vadd.xlane.f32.xlu1 %v583_v55  ;;  %v589_v61 = vsel %vm32_vm0, %v1838_v56, 0.0 }
 0x37c   :  { %1654 = vpow2.f32 %v572_v54  ;;  %v562_v58 = vsub.f32 %v530_v28, %v552_v57 }
 0x37e   :  { %v1840_v59 = vpop.eup %1646  ;;  %v576_v60 = vmul.f32 1.442695, %v562_v58 }
 0x37f   :  { %590 = vadd.xlane.f32.xlu1 %v589_v61  ;;  %v580_v62 = vsel %vm32_vm0, %v1840_v59, 0.0 }
 0x380   :  { %1656 = vpow2.f32 %v576_v60  ;;  %581 = vadd.xlane.f32.xlu0 %v580_v62 }
 0x381   :  { %v1846_v63 = vpop.eup %1648 }
 0x382   :  { %v1848_v2 = vpop.eup %1650  ;;  %v595_v3 = vsel %vm32_vm0, %v1846_v63, 0.0 }
 0x383   :  { %596 = vadd.xlane.f32.xlu1 %v595_v3  ;;  %v586_v4 = vsel %vm32_vm0, %v1848_v2, 0.0 }
 0x384   :  { %587 = vadd.xlane.f32.xlu0 %v586_v4 }
 0x385   :  { %v1854_v5 = vpop.eup %1652 }
 0x386   :  { %v1856_v6 = vpop.eup %1654  ;;  %v601_v7 = vsel %vm32_vm0, %v1854_v5, 0.0 }
 0x387   :  { %602 = vadd.xlane.f32.xlu1 %v601_v7  ;;  %v592_v8 = vsel %vm32_vm0, %v1856_v6, 0.0 }
 0x388   :  { %593 = vadd.xlane.f32.xlu0 %v592_v8 }
 0x38a   :  { %v1862_v9 = vpop.eup %1656 }
 0x38b   :  { %v598_v10 = vsel %vm32_vm0, %v1862_v9, 0.0 }
 0x38c   :  { %599 = vadd.xlane.f32.xlu0 %v598_v10 }
 0x398   :  { %1624 = vrot.lane.b32.xlu1 %v1785_v42, %s1713_s5  ;;  %s1720_s5 = smov [#allocation2]  }
 0x39c   :  { %1629 = vrot.lane.b32.xlu1 %v1785_v42, %s1714_s6  ;;  %s1335_s6 = sshll.u32 %s1720_s5, 4  ;;  %s1336_s6 = int_to_ptr.vmem [resolvable:$true] %s1335_s6 }
 0x39d   :  { %p1687_p1 = scmp.lt.s32.totalorder %s1336_s6, %s1336_s6 }
 0x3a0   :  { %1634 = vrot.lane.b32.xlu1 %v1785_v42, %s1715_s7  ;;  %s1682_s7 = scalar_lea.vmem %s1336_s6, 256 }
 0x3a1   :  { %p1683_p0 = scmp.ne.s32.totalorder %s1336_s6, %s1682_s7  ;;  %p1688_p2 = scmp.lt.s32.totalorder %s1682_s7, %s1682_s7 }
 0x3a2   :  { %1619 = vrot.lane.b32.xlu0 %v1785_v42, %s1716_s8 }
 0x3a3   :  { %p1689_p3 = por %p1688_p2, %p1687_p1 }
 0x3a5   :  { %p1690_p4 = pnand %p1689_p3, %p1683_p0 }
 0x408   :  { %v585_v11 = vpop.xlane.xlu1 %584 }
 0x409   :  { %1658 = vrcp.f32 %v585_v11 }
 0x40c   :  { %v591_v12 = vpop.xlane.xlu1 %590 }
 0x40d   :  { %1660 = vrcp.f32 %v591_v12  ;;  %v582_v13 = vpop.xlane.xlu0 %581 }
 0x40e   :  { %1662 = vrcp.f32 %v582_v13 }
 0x410   :  { %v597_v14 = vpop.xlane.xlu1 %596 }
 0x411   :  { %1664 = vrcp.f32 %v597_v14  ;;  %v588_v15 = vpop.xlane.xlu0 %587 }
 0x412   :  { %1666 = vrcp.f32 %v588_v15 }
 0x413   :  { %v1659_v16 = vpop.eup %1658 }
 0x414   :  { %v603_v17 = vpop.xlane.xlu1 %602  ;;  %v613_v20 = vmul.f32 %v1659_v16, %v585_v11 }
 0x415   :  { %1668 = vrcp.f32 %v603_v17  ;;  %v594_v18 = vpop.xlane.xlu0 %593 }
 0x416   :  { %1670 = vrcp.f32 %v594_v18  ;;  %v621_v30 = vsub.f32 2.0, %v613_v20 }
 0x417   :  { %v1661_v19 = vpop.eup %1660 }
 0x418   :  { %v1663_v21 = vpop.eup %1662  ;;  %v615_v22 = vmul.f32 %v1661_v19, %v591_v12  ;;  %v1625_v42 = vpop.permute.xlu1 %1624  ;;  %v629_v46 = vmul.f32 %v1659_v16, %v621_v30 }
 0x419   :  { %v612_v23 = vmul.f32 %v1663_v21, %v582_v13  ;;  %v1627_v24 = vunpack.i.h.bf16 %v1625_v42  ;;  %v1626_v25 = vunpack.i.l.bf16 %v1625_v42  ;;  %v600_v26 = vpop.xlane.xlu0 %599 }
 0x41a   :  { %1672 = vrcp.f32 %v600_v26  ;;  %v623_v34 = vsub.f32 2.0, %v615_v22  ;;  %v637_v8 = vmul.f32 %v1834_v52, %v629_v46 }
 0x41b   :  { %v1665_v28 = vpop.eup %1664  ;;  %v620_v31 = vsub.f32 2.0, %v612_v23  ;;  %v1554_v32 = vpack.c.bf16 %v1627_v24, %v1626_v25 }
 0x41c   :  { %v1667_v33 = vpop.eup %1666  ;;  %v617_v35 = vmul.f32 %v1665_v28, %v597_v14  ;;  %v1630_v36 = vpop.permute.xlu1 %1629  ;;  %v631_v50 = vmul.f32 %v1661_v19, %v623_v34 }
 0x41d   :  { %v628_v37 = vmul.f32 %v1663_v21, %v620_v31  ;;  %v614_v38 = vmul.f32 %v1667_v33, %v588_v15  ;;  %v1620_v39 = vpop.permute.xlu0 %1619  ;;  %1555 = vmatprep.subr.bf16.mxu0 %v1554_v32  ;;  %v1632_v40 = vunpack.i.h.bf16 %v1630_v36  ;;  %v1631_v41 = vunpack.i.l.bf16 %v1630_v36 }
 0x41e   :  { %v1622_v43 = vunpack.i.h.bf16 %v1620_v39  ;;  %v1621_v44 = vunpack.i.l.bf16 %v1620_v39  ;;  %1557 = vmatpush3.bf16.msra.mxu0 %v1554_v32  ;;  %v625_v51 = vsub.f32 2.0, %v617_v35  ;;  %v639_v10 = vmul.f32 %v1838_v56, %v631_v50  ;;  %v1375_v39 = vld [vmem:[%s1967_s1 + $0x63] ss:$0 sm:$0xff] }
 0x41f   :  { %v1669_v45 = vpop.eup %1668  ;;  %v636_v47 = vmul.f32 %v1840_v59, %v628_v37  ;;  %v622_v48 = vsub.f32 2.0, %v614_v38  ;;  %v1558_v62 = vpack.c.bf16 %v1632_v40, %v1631_v41 }
 0x420   :  { %v1671_v49 = vpop.eup %1670  ;;  %v619_v53 = vmul.f32 %v1669_v45, %v603_v17  ;;  %v1550_v54 = vpack.c.bf16 %v1622_v43, %v1621_v44  ;;  %v1635_v55 = vpop.permute.xlu1 %1634  ;;  %v633_v11 = vmul.f32 %v1665_v28, %v625_v51  ;;  %v16_v51 = vld [vmem:[%s1967_s1 + $0x10] sm:$0xff] }
 0x421   :  { %v630_v57 = vmul.f32 %v1667_v33, %v622_v48  ;;  %v616_v58 = vmul.f32 %v1671_v49, %v594_v18  ;;  %v1637_v60 = vunpack.i.h.bf16 %v1635_v55  ;;  %v1636_v61 = vunpack.i.l.bf16 %v1635_v55  ;;  %1473 = vmatprep.mubr.msk.f32.mxu1 %vm32_vm0, %v636_v47 }
 0x422   :  { %1551 = vmatprep.subr.bf16.mxu1 %v1550_v54  ;;  %v627_v12 = vsub.f32 2.0, %v619_v53  ;;  %v641_v52 = vmul.f32 %v1846_v63, %v633_v11  ;;  %v23_v63 = vld [vmem:[%s1967_s1 + $0x48] sm:$0xff]  ;;  %v17_v53 = vld [vmem:[%s1967_s1 + $0x18] sm:$0xff] }
 0x423   :  { %v638_v3 = vmul.f32 %v1848_v2, %v630_v57  ;;  %v624_v4 = vsub.f32 2.0, %v616_v58  ;;  %v1562_v7 = vpack.c.bf16 %v1637_v60, %v1636_v61  ;;  %1553 = vmatpush3.bf16.msra.mxu1 %v1550_v54  ;;  %v1570_v54 = vpack.c.bf16 %v17_v53, %v16_v51 }
 0x424   :  { %v1673_v59 = vpop.eup %1672  ;;  %1559 = vmatprep.subr.bf16.mxu1 %v1558_v62  ;;  %v635_v56 = vmul.f32 %v1669_v45, %v627_v12 }
 0x425   :  { %v632_v13 = vmul.f32 %v1671_v49, %v624_v4  ;;  %v618_v14 = vmul.f32 %v1673_v59, %v600_v26  ;;  %1480 = vmatprep.mubr.msk.f32.mxu0 %vm32_vm0, %v638_v3  ;;  %1563 = vmatprep.subr.bf16.mxu0 %v1562_v7 }
 0x426   :  { %1474 = vmatmul.mubr.msk.f32.vlgmr.msra.gmra.mrb[4].mxu1 %vm32_vm0, %v637_v8  ;;  %1481 = vmatmul.mubr.msk.f32.vlgmr.msra.gmra.mrb[6].mxu0 %vm32_vm0, %v639_v10  ;;  %v643_v18 = vmul.f32 %v1854_v5, %v635_v56 }
 0x427   :  { %v640_v2 = vmul.f32 %v1856_v6, %v632_v13  ;;  %v626_v15 = vsub.f32 2.0, %v618_v14  ;;  %1561 = vmatpush3.bf16.msra.mxu1 %v1558_v62  ;;  %1565 = vmatpush3.bf16.msra.mxu0 %v1562_v7  ;;  %v22_v6 = vld [vmem:[%s1967_s1 + $0x40] sm:$0xff] }
 0x428   :  { %v1566_v19 = vpack.c.bf16 %v23_v63, %v22_v6  ;;  %1571 = vmatprep.subr.bf16.mxu0 %v1570_v54  ;;  %v18_v63 = vld [vmem:[%s1967_s1 + $0x20] sm:$0xff] }
 0x429   :  { %v634_v16 = vmul.f32 %v1673_v59, %v626_v15  ;;  %1487 = vmatprep.mubr.msk.f32.mxu1 %vm32_vm0, %v640_v2 }
 0x42a   :  { %1488 = vmatmul.mubr.msk.f32.vlgmr.msra.gmra.mrb[6].mxu1 %vm32_vm0, %v641_v52  ;;  %1567 = vmatprep.subr.bf16.mxu1 %v1566_v19 }
 0x42b   :  { %v642_v17 = vmul.f32 %v1862_v9, %v634_v16  ;;  %1569 = vmatpush3.bf16.msra.mxu1 %v1566_v19  ;;  %v19_v19 = vld [vmem:[%s1967_s1 + $0x28] sm:$0xff] }
 0x42d   :  { %1494 = vmatprep.mubr.msk.f32.mxu0 %vm32_vm0, %v642_v17 }
 0x42e   :  { %1495 = vmatmul.mubr.msk.f32.vlgmr.msra.gmra.mrb[8].mxu0 %vm32_vm0, %v643_v18 }
 0x42f   :  { %1573 = vmatpush3.bf16.msra.mxu0 %v1570_v54 }
 0x4f9   :  { %v1475_v20 = vpop.f32.mrb[4].mxu1  ;;  %v1482_v21 = vpop.f32.mrb[6].mxu0 }
 0x4fa   :  { %996 = vrot.lane.b32.xlu1 %v1482_v21, %s1717_s0  ;;  %v722_v5 = vpop.f32.mrb[5].mxu1  ;;  %v809_v9 = vpop.f32.mrb[7].mxu0  ;;  %v20_v21 = vld [vmem:[%s1967_s1 + $0x30] sm:$0xff] }
 0x4fb   :  { %994 = vrot.lane.b32.xlu0 %v809_v9, %s1717_s0 }
 0x4fd   :  { %v1489_v22 = vpop.f32.mrb[6].mxu1 }
 0x4fe   :  { %1004 = vrot.lane.b32.xlu1 %v1489_v22, %s1718_s13  ;;  %v896_v42 = vpop.f32.mrb[7].mxu1 }
 0x4ff   :  { %1002 = vrot.lane.b32.xlu0 %v896_v42, %s1718_s13 }
 0x501   :  { %v1496_v23 = vpop.f32.mrb[8].mxu0 }
 0x502   :  { %v983_v24 = vpop.f32.mrb[9].mxu0  ;;  %1012 = vrot.lane.b32.xlu1 %v1496_v23, %s1719_s14 }
 0x503   :  { %1010 = vrot.lane.b32.xlu0 %v983_v24, %s1719_s14 }
 0x56c   :  { %v997_v25 = vpop.permute.xlu1 %996 }
 0x56d   :  { %v995_v26 = vpop.permute.xlu0 %994  ;;  %v1017_v33 = vsel %vm167_vm1, %v1475_v20, %v997_v25  ;;  %v1574_v20 = vpack.c.bf16 %v19_v19, %v18_v63 }
 0x56e   :  { %v1016_v31 = vsel %vm167_vm1, %v722_v5, %v995_v26  ;;  %v1378_v5 = vld [vmem:[%s1967_s1 + $0x64] ss:$0 sm:$0xff] }
 0x56f   :  { %1575 = vmatprep.subr.bf16.mxu1 %v1574_v20 }
 0x570   :  { %v1005_v28 = vpop.permute.xlu1 %1004 }
 0x571   :  { %v1003_v30 = vpop.permute.xlu0 %1002  ;;  %v1020_v36 = vsel %vm1018_vm3, %v1017_v33, %v1005_v28 }
 0x572   :  { %v1019_v34 = vsel %vm1018_vm3, %v1016_v31, %v1003_v30 }
 0x574   :  { %v1013_v32 = vpop.permute.xlu1 %1012 }
 0x575   :  { %v1011_v35 = vpop.permute.xlu0 %1010  ;;  %v1023_v38 = vsel %vm1021_vm4, %v1020_v36, %v1013_v32  ;;  %v1381_v36 = vld [vmem:[%s1967_s1 + $0x65] ss:$0 sm:$0xff] }
 0x576   :  { %v1022_v37 = vsel %vm1021_vm4, %v1019_v34, %v1011_v35 }
 0x577   :  { %1501 = vmatprep.mubr.msk.f32.mxu1 %vm32_vm0, %v1022_v37 }
 0x578   :  { %1502 = vmatmul.mubr.msk.f32.vlgmr.msra.gmra.mrb[8].mxu1 %vm32_vm0, %v1023_v38 }
 0x579   :  { %1577 = vmatpush3.bf16.msra.mxu1 %v1574_v20 }
 0x64b   :  { %v1503_v40 = vpop.f32.mrb[8].mxu1 }
 0x64c   :  { %v1106_v41 = vadd.f32 %v1503_v40, %v1375_v39  ;;  %v1100_v43 = vpop.f32.mrb[9].mxu1 }
 0x64d   :  { %v1101_v44 = vadd.f32 %v1375_v39, %v1100_v43 }
 0x64e   :  { %v1902_v45 = vadd.f32 %v1106_v41, %v1745_v1 }
 0x64f   :  { %v1905_v46 = vadd.f32 %v1101_v44, %v1740_v0 }
 0x650   :  { %v1114_v47 = vsel %vm32_vm0, %v1902_v45, 0.0  ;;  %v1120_v1 = vmul.f32 %v1902_v45, %v1902_v45 }
 0x651   :  { %1115 = vadd.xlane.f32.xlu1 %v1114_v47  ;;  %v1111_v48 = vsel %vm32_vm0, %v1905_v46, 0.0  ;;  %v1119_v49 = vmul.f32 %v1905_v46, %v1905_v46 }
 0x652   :  { %1112 = vadd.xlane.f32.xlu0 %v1111_v48  ;;  %v1124_v0 = vsel %vm32_vm0, %v1120_v1, 0.0 }
 0x653   :  { %v1121_v50 = vsel %vm32_vm0, %v1119_v49, 0.0 }
 0x656   :  { %1122 = vadd.xlane.f32.xlu0 %v1121_v50 }
 0x65a   :  { %1125 = vadd.xlane.f32.xlu0 %v1124_v0 }
 0x6de   :  { %v1116_v58 = vpop.xlane.xlu1 %1115 }
 0x6df   :  { %v1113_v55 = vpop.xlane.xlu0 %1112  ;;  %v1118_v61 = vmul.f32 0.0625, %v1116_v58 }
 0x6e0   :  { %v1117_v57 = vmul.f32 0.0625, %v1113_v55 }
 0x6e1   :  { %v1130_v59 = vmul.f32 %v1118_v61, %v1118_v61  ;;  %v1134_v15 = vsub.f32 %v1902_v45, %v1118_v61 }
 0x6e2   :  { %v1129_v62 = vmul.f32 %v1117_v57, %v1117_v57  ;;  %v1133_v13 = vsub.f32 %v1905_v46, %v1117_v57 }
 0x6e3   :  { %v1123_v60 = vpop.xlane.xlu0 %1122 }
 0x6e4   :  { %v1127_v3 = vmul.f32 0.0625, %v1123_v60 }
 0x6e6   :  { %v1131_v4 = vsub.f32 %v1127_v3, %v1129_v62 }
 0x6e7   :  { %v1126_v7 = vpop.xlane.xlu0 %1125 }
 0x6e8   :  { %v1135_v8 = vadd.f32 1e-05, %v1131_v4  ;;  %v1128_v10 = vmul.f32 0.0625, %v1126_v7 }
 0x6ea   :  { %1674 = vrsqrt.f32 %v1135_v8  ;;  %v1132_v11 = vsub.f32 %v1128_v10, %v1130_v59 }
 0x6ec   :  { %v1136_v12 = vadd.f32 1e-05, %v1132_v11 }
 0x6ee   :  { %1676 = vrsqrt.f32 %v1136_v12 }
 0x6f4   :  { %v1675_v14 = vpop.eup %1674 }
 0x6f5   :  { %v1139_v2 = vmul.f32 %v1675_v14, %v1133_v13 }
 0x6f7   :  { %v1141_v52 = vmul.f32 %v1767_v27, %v1139_v2 }
 0x6f8   :  { %v1677_v56 = vpop.eup %1676 }
 0x6f9   :  { %v1140_v16 = vmul.f32 %v1677_v56, %v1134_v15  ;;  %v1143_v17 = vadd.f32 %v1772_v29, %v1141_v52 }
 0x6fb   :  { %1508 = vmatprep.mubr.msk.f32.mxu0 %vm32_vm0, %v1143_v17  ;;  %v1142_v18 = vmul.f32 %v1767_v27, %v1140_v16  ;;  %v21_v27 = vld [vmem:[%s1967_s1 + $0x38] sm:$0xff] }
 0x6fd   :  { %v1144_v6 = vadd.f32 %v1772_v29, %v1142_v18  ;;  %v1578_v29 = vpack.c.bf16 %v21_v27, %v20_v21 }
 0x6ff   :  { %1509 = vmatmul.mubr.msk.f32.vlgmr.msra.gmra.mrb[10].mxu0 %vm32_vm0, %v1144_v6  ;;  %1579 = vmatprep.subr.bf16.mxu1 %v1578_v29 }
 0x700   :  { %1581 = vmatpush3.bf16.msra.mxu1 %v1578_v29 }
 0x7d2   :  { %v1510_v9 = vpop.f32.mrb[10].mxu0 }
 0x7d3   :  { %v1227_v22 = vadd.f32 %v1510_v9, %v1378_v5  ;;  %v1221_v42 = vpop.f32.mrb[11].mxu0 }
 0x7d4   :  { %v1222_v23 = vadd.f32 %v1378_v5, %v1221_v42 }
 0x7d5   :  { %v1233_v24 = vmul.f32 0.70710677, %v1227_v22  ;;  %v1231_v33 = vmul.f32 0.5, %v1227_v22 }
 0x7d6   :  { %v1232_v25 = vmul.f32 0.70710677, %v1222_v23  ;;  %v1230_v31 = vmul.f32 0.5, %v1222_v23 }
 0x7d7   :  { %1678 = verf.f32 %v1233_v24 }
 0x7d8   :  { %1680 = verf.f32 %v1232_v25 }
 0x7e1   :  { %v1679_v26 = vpop.eup %1678 }
 0x7e2   :  { %v1681_v28 = vpop.eup %1680  ;;  %v1237_v30 = vadd.f32 1.0, %v1679_v26 }
 0x7e3   :  { %v1236_v32 = vadd.f32 1.0, %v1681_v28 }
 0x7e4   :  { %v1239_v35 = vmul.f32 %v1237_v30, %v1231_v33 }
 0x7e5   :  { %v1238_v34 = vmul.f32 %v1236_v32, %v1230_v31 }
 0x7e7   :  { %1519 = vmatprep.mubr.msk.f32.mxu1 %vm1244_vm5, %v1238_v34 }
 0x7e8   :  { %1520 = vmatmul.mubr.msk.f32.vlgmr.msra.gmra.mrb[10].mxu1 %vm1244_vm5, %v1239_v35 }
 0x8bb   :  { %v1521_v37 = vpop.f32.mrb[10].mxu1 }
 0x8bc   :  { %v1323_v38 = vadd.f32 %v1521_v37, %v1381_v36  ;;  %v1317_v39 = vpop.f32.mrb[11].mxu1 }
 0x8bd   :  { %v1318_v40 = vadd.f32 %v1381_v36, %v1317_v39 }
 0x8be   :  { %v1327_v41 = vadd.f32 %v1323_v38, %v1902_v45 }
 0x8bf   :  { %v1326_v43 = vadd.f32 %v1318_v40, %v1905_v46 }
 0x8c0   :  { %1329 = vst.msk [vmem:[#allocation2 + $0x8] sm:$0xff] %vm32_vm0, %v1327_v41 }
 0x8c1   :  { %1328 = vst.msk [vmem:[#allocation2] sm:$0xff] %vm32_vm0, %v1326_v43 }
 0x8c2   :  { %1693 = shalt.err (!%p1690_p4)
}
 0x8c3   :  { %s1694_s9 = scalar_lea.hbm %s1968_s2, 256 }
 0x8c4   :  { %p1695_p5 = scmp.ne.s32.totalorder %s1968_s2, %s1694_s9  ;;  %p1698_p6 = scmp.lt.u32.totalorder %s1694_s9, %s1968_s2 }
 0x8c6   :  { %p1700_p7 = pnand %p1698_p6, %p1695_p5 }
 0x8c8   :  { %1703 = shalt.err (!%p1700_p7)
}
 0x8c9   :  { %s1721_s14 = smov 128  }
 0x8ca   :  { %1341 = dma.vmem_to_hbm [thread:$0]  %s1336_s6, 256, %s1968_s2, [#allocation3], %s1721_s14, %s1721_s14, %s1718_s13  }
 0x8cb   :  { %1704 = dma.done.wait [#allocation3], 256  }
 0x8cc   :  { %1705 = vsyncadd [#allocation3], 4294967040 }
 0x8cd   :  { %1345 = vsyncpa [#allocation3], 1 }

</bundles_post_ra>
